<compile_context>
chip_gen: v7x
topology: tpu7x:2x2x1
jax: 0.10.0
libtpu: 0.0.40
codegen_flags: <defaults>
</compile_context>

<pallas_src>
import functools

import jax
import jax.numpy as jnp
from jax import lax
from jax.experimental import pallas as pl
from jax.experimental.pallas import tpu as pltpu

LN_EPS = 1e-5  # torch.nn.LayerNorm default


def _round_up(x, m):
    return -(-x // m) * m


def _traj_embed_kernel(x_ref, p_ref, o_ref, *, pack, d):
    """x_ref: (TM2, 2*pack) packed xy rows (pack logical rows per physical row).
    p_ref: (8, W) parameter slab, W = pack*d:
        rows [0 .. 2*pack-1] : segment-placed, mean-centered W^T rows
        row  2*pack          : mean-centered bias (tiled per segment)
        row  2*pack + 1      : LN gamma (tiled)
        row  2*pack + 2      : LN beta  (tiled)
        row  2*pack + 3      : (pack==2 only) 1.0 on segment-0 lanes, else 0.0
    o_ref: (TM2, W) output block."""
    x = x_ref[...].astype(jnp.float32)
    p = p_ref[...].astype(jnp.float32)

    w_rows = 2 * pack  # number of placed-weight rows in the slab

    # Linear(2, D) as VPU broadcast-FMAs (a K=2/K=4 MXU matmul wastes the MXU).
    # Weights in the slab are already masked/placed per segment, so the packed
    # layout needs no selects here.
    # TODO(synk): on v7x, if the bundle shows the vector-extended (lane
    #             broadcast) slot binding, try routing this through jnp.dot on
    #             the MXU and measure.
    y = p[w_rows:w_rows + 1, :]                       # centered bias row, (1, W)
    for k in range(w_rows):                           # static unrolled loop
        y = y + x[:, k:k + 1] * p[k:k + 1, :]         # -> (TM2, W)

    # LayerNorm.  W^T / bias were pre-centered over D in the wrapper, so
    # mean_D(y) == 0 by construction; only the per-segment variance remains.
    ysq = y * y
    if pack == 1:
        var = jnp.sum(ysq, axis=-1, keepdims=True) * (1.0 / d)
    else:  # pack == 2: two independent D-wide reductions per physical row.
        m0 = p[w_rows + 3:w_rows + 4, :]              # 1.0 on segment-0 lanes
        s0 = jnp.sum(ysq * m0, axis=-1, keepdims=True)
        s1 = jnp.sum(ysq, axis=-1, keepdims=True) - s0
        var = (s1 + (s0 - s1) * m0) * (1.0 / d)       # per-lane segment select
    y_norm = y * lax.rsqrt(var + LN_EPS)

    g = p[w_rows + 1:w_rows + 2, :]
    be = p[w_rows + 2:w_rows + 3, :]
    o_ref[...] = (y_norm * g + be).astype(o_ref.dtype)


def prepare_traj_embedding_params(weight, bias, ln_gamma, ln_beta):
    """Build the (8, pack*D) parameter slab once per parameter set.

    weight: (D, 2) (PyTorch nn.Linear layout); bias/ln_gamma/ln_beta: (D,).
    Parameters change rarely, so call this once and reuse the slab."""
    D = int(weight.shape[0])
    pack = 2 if D < 128 else 1
    W = pack * D

    # Pre-center W^T columns / bias over D so mean_D(y) == 0 by construction.
    w_t = weight.T.astype(jnp.float32)                       # (2, D)
    w_t = w_t - jnp.mean(w_t, axis=1, keepdims=True)
    b_c = bias.astype(jnp.float32)
    b_c = b_c - jnp.mean(b_c)

    slab = jnp.zeros((8, W), jnp.float32)
    for seg in range(pack):
        sl = slice(seg * D, (seg + 1) * D)
        slab = slab.at[2 * seg + 0, sl].set(w_t[0])
        slab = slab.at[2 * seg + 1, sl].set(w_t[1])
    slab = slab.at[2 * pack + 0].set(jnp.tile(b_c, (pack,)))
    slab = slab.at[2 * pack + 1].set(jnp.tile(ln_gamma.astype(jnp.float32), (pack,)))
    slab = slab.at[2 * pack + 2].set(jnp.tile(ln_beta.astype(jnp.float32), (pack,)))
    if pack == 2:
        lane_mask = (jnp.arange(W) < D).astype(jnp.float32)  # segment-0 lanes
        slab = slab.at[2 * pack + 3].set(lane_mask)
    return slab


@functools.partial(jax.jit,
                   static_argnames=("embedding_dim", "row_tile", "out_dtype"))
def traj_embedding_forward(obs_traj, slab, *, embedding_dim,
                           row_tile=16384, out_dtype=jnp.float32):
    """obs_traj: (seq_len, batch, 2); slab from prepare_traj_embedding_params.
    returns: (seq_len, batch, embedding_dim) in out_dtype (default float32)."""
    seq_len, batch, two = obs_traj.shape
    assert two == 2
    D = int(embedding_dim)
    W = slab.shape[1]
    pack = W // D
    assert pack * D == W and pack in (1, 2)

    N = seq_len * batch
    x = obs_traj.reshape(N, 2).astype(jnp.float32)
    # Always take the 128-lane-dense packed path: pad at most one zero row so N
    # is a multiple of `pack`, and drop it again after the kernel.
    N_pad = _round_up(N, pack)
    if N_pad != N:
        x = jnp.concatenate([x, jnp.zeros((N_pad - N, 2), jnp.float32)], axis=0)
    N2 = N_pad // pack
    # Row-major reshape groups `pack` consecutive logical rows per physical row.
    x = x.reshape(N2, 2 * pack)

    # --- Tile selection -----------------------------------------------------
    # Big blocks amortize the ~0.35us per-grid-step overhead; >= ~8 steps for
    # large inputs keep the DMA pipeline deep and let v7x shard the row axis
    # across its 2 TensorCores.  The (tm2, 2*pack) f32 input block lane-pads to
    # 128 lanes in VMEM (512 B/row), so it is budgeted like the output block.
    out_itemsize = jnp.dtype(out_dtype).itemsize
    in_row_bytes = 128 * 4
    out_row_bytes = W * out_itemsize
    buf_row_bytes = 2 * (in_row_bytes + out_row_bytes)        # double-buffered

    tm2_cap = _round_up(max(row_tile // pack, 8), 8)          # user/default cap
    tm2 = min(tm2_cap,
              _round_up(max(pl.cdiv(N2, 8), 4096), 8))        # >=8 steps if big
    vmem_budget = 40 << 20                                    # safe on v5e/v6e/v7x
    tm2 = min(tm2, max((vmem_budget // buf_row_bytes) // 8 * 8, 8))
    if tm2 >= N2:
        tm2 = N2     # full-extent block (also satisfies the (8,128) rule)
    grid = (pl.cdiv(N2, tm2),)   # tail block (if any) is clipped by Pallas
    # NOTE: clipped tail rows compute on stale VMEM; safe because every row is
    # independent and clipped on writeback.

    vmem_limit = tm2 * buf_row_bytes + 2 * 8 * W * 4 + (4 << 20)
    vmem_limit = int(min(max(vmem_limit, 16 << 20), 48 << 20))

    out = pl.pallas_call(
        functools.partial(_traj_embed_kernel, pack=pack, d=D),
        out_shape=jax.ShapeDtypeStruct((N2, W), out_dtype),
        grid_spec=pltpu.PrefetchScalarGridSpec(
            num_scalar_prefetch=0,
            grid=grid,
            in_specs=[
                pl.BlockSpec((tm2, 2 * pack), lambda i: (i, 0)),  # packed xy rows
                pl.BlockSpec((8, W), lambda i: (0, 0)),           # param slab
            ],
            out_specs=pl.BlockSpec((tm2, W), lambda i: (i, 0)),
        ),
        compiler_params=pltpu.CompilerParams(
            # Single data-parallel axis (sharded across the 2 TCs on v7x).
            dimension_semantics=("parallel",),
            vmem_limit_bytes=vmem_limit,
        ),
    )(x, slab)

    # (N2, pack*D) -> (N_pad, D) is layout-preserving; drop the padding row.
    out = out.reshape(N_pad, D)
    if N_pad != N:
        out = out[:N]
    return out.reshape(seq_len, batch, D)


def traj_embedding_apply(obs_traj, weight, bias, ln_gamma, ln_beta, **kwargs):
    """Convenience one-shot wrapper (builds the slab every call)."""
    slab = prepare_traj_embedding_params(weight, bias, ln_gamma, ln_beta)
    return traj_embedding_forward(obs_traj, slab,
                                  embedding_dim=int(weight.shape[0]), **kwargs)


def _reference(obs_traj, weight, bias, ln_gamma, ln_beta):
    seq_len, batch, _ = obs_traj.shape
    D = weight.shape[0]
    y = obs_traj.reshape(-1, 2) @ weight.T + bias
    y = y.reshape(-1, batch, D)
    mean = jnp.mean(y, axis=-1, keepdims=True)
    var = jnp.mean((y - mean) ** 2, axis=-1, keepdims=True)
    return (y - mean) / jnp.sqrt(var + LN_EPS) * ln_gamma + ln_beta


if __name__ == "__main__":
    key = jax.random.PRNGKey(0)
    k_x, k_w, k_b, k_g, k_beta = jax.random.split(key, 5)

    D = 64  # embedding_dim (module default)

    # Deterministic synthetic parameters (nn.Linear(2, D), nn.LayerNorm(D)).
    weight = jax.random.normal(k_w, (D, 2), dtype=jnp.float32) * 0.5
    bias = jax.random.normal(k_b, (D,), dtype=jnp.float32) * 0.1
    ln_gamma = 1.0 + 0.05 * jax.random.normal(k_g, (D,), dtype=jnp.float32)
    ln_beta = 0.05 * jax.random.normal(k_beta, (D,), dtype=jnp.float32)

    # Parameter slab built once, reused for every forward call.
    slab = prepare_traj_embedding_params(weight, bias, ln_gamma, ln_beta)

    # Case 1: even N -> packed (pack=2, 128-lane dense) path.
    obs1 = jax.random.normal(k_x, (8, 2, 2), dtype=jnp.float32)
    out1 = jax.block_until_ready(
        traj_embedding_forward(obs1, slab, embedding_dim=D))
    ref1 = _reference(obs1, weight, bias, ln_gamma, ln_beta)
    assert out1.shape == (8, 2, D)
    assert jnp.allclose(out1, ref1, atol=1e-4, rtol=1e-4), "mismatch (packed path)"

    # Case 2: odd N -> wrapper pads one row, still the packed lane-dense path.
    obs2 = jax.random.normal(jax.random.PRNGKey(1), (5, 3, 2), dtype=jnp.float32)
    out2 = jax.block_until_ready(
        traj_embedding_forward(obs2, slab, embedding_dim=D))
    ref2 = _reference(obs2, weight, bias, ln_gamma, ln_beta)
    assert out2.shape == (5, 3, D)
    assert jnp.allclose(out2, ref2, atol=1e-4, rtol=1e-4), "mismatch (odd-N path)"

    # Case 3: small row_tile to exercise multi-step grid + clipped tail block.
    obs3 = jax.random.normal(jax.random.PRNGKey(2), (9, 6, 2), dtype=jnp.float32)
    out3 = jax.block_until_ready(
        traj_embedding_forward(obs3, slab, embedding_dim=D, row_tile=16))
    ref3 = _reference(obs3, weight, bias, ln_gamma, ln_beta)
    assert out3.shape == (9, 6, D)
    assert jnp.allclose(out3, ref3, atol=1e-4, rtol=1e-4), "mismatch (tail-block path)"

    # Case 4: bf16 output option (halves HBM writeback bytes on v5e/v6e).
    out4 = jax.block_until_ready(
        traj_embedding_forward(obs1, slab, embedding_dim=D, out_dtype=jnp.bfloat16))
    assert out4.dtype == jnp.bfloat16 and out4.shape == (8, 2, D)
    assert jnp.allclose(out4.astype(jnp.float32), ref1, atol=5e-2, rtol=5e-2), \
        "mismatch (bf16 path)"

    print("KERNEL_OK")
</pallas_src>

<mosaic_0001>
module attributes {stable_mosaic.version = 11 : i64} {
  func.func @_traj_embed_kernel(%arg0: i32, %arg1: memref<8x4xf32, #tpu.memory_space<vmem>>, %arg2: memref<8x128xf32, #tpu.memory_space<vmem>>, %arg3: memref<8x128xf32, #tpu.memory_space<vmem>>) attributes {dimension_semantics = [#tpu.dimension_semantics<parallel>], iteration_bounds = array<i64: 1>, scalar_prefetch = 0 : i64, scratch_operands = 0 : i64, tpu.core_type = #tpu.core_type<tc>, window_params = [{transform_indices = @transform_0, window_bounds = array<i64: 8, 4>}, {pipeline_mode = #tpu.pipeline_mode<synchronous>, transform_indices = @transform_1, window_bounds = array<i64: 8, 128>}, {transform_indices = @transform_2, window_bounds = array<i64: 8, 128>}]} {
    %c0 = arith.constant 0 : index
    %c0_0 = arith.constant 0 : index
    %0 = vector.load %arg1[%c0, %c0_0] : memref<8x4xf32, #tpu.memory_space<vmem>>, vector<8x4xf32>
    %c0_1 = arith.constant 0 : index
    %c0_2 = arith.constant 0 : index
    %1 = vector.load %arg2[%c0_1, %c0_2] : memref<8x128xf32, #tpu.memory_space<vmem>>, vector<8x128xf32>
    %2 = vector.extract_strided_slice %1 {offsets = [4, 0], sizes = [1, 128], strides = [1, 1]} : vector<8x128xf32> to vector<1x128xf32>
    %3 = vector.extract_strided_slice %0 {offsets = [0, 0], sizes = [8, 1], strides = [1, 1]} : vector<8x4xf32> to vector<8x1xf32>
    %4 = vector.extract_strided_slice %1 {offsets = [0, 0], sizes = [1, 128], strides = [1, 1]} : vector<8x128xf32> to vector<1x128xf32>
    %5 = vector.broadcast %3 : vector<8x1xf32> to vector<8x128xf32>
    %6 = vector.broadcast %4 : vector<1x128xf32> to vector<8x128xf32>
    %7 = arith.mulf %5, %6 : vector<8x128xf32>
    %8 = vector.broadcast %2 : vector<1x128xf32> to vector<8x128xf32>
    %9 = arith.addf %8, %7 : vector<8x128xf32>
    %10 = vector.extract_strided_slice %0 {offsets = [0, 1], sizes = [8, 1], strides = [1, 1]} : vector<8x4xf32> to vector<8x1xf32>
    %11 = vector.extract_strided_slice %1 {offsets = [1, 0], sizes = [1, 128], strides = [1, 1]} : vector<8x128xf32> to vector<1x128xf32>
    %12 = vector.broadcast %10 : vector<8x1xf32> to vector<8x128xf32>
    %13 = vector.broadcast %11 : vector<1x128xf32> to vector<8x128xf32>
    %14 = arith.mulf %12, %13 : vector<8x128xf32>
    %15 = arith.addf %9, %14 : vector<8x128xf32>
    %16 = vector.extract_strided_slice %0 {offsets = [0, 2], sizes = [8, 1], strides = [1, 1]} : vector<8x4xf32> to vector<8x1xf32>
    %17 = vector.extract_strided_slice %1 {offsets = [2, 0], sizes = [1, 128], strides = [1, 1]} : vector<8x128xf32> to vector<1x128xf32>
    %18 = vector.broadcast %16 : vector<8x1xf32> to vector<8x128xf32>
    %19 = vector.broadcast %17 : vector<1x128xf32> to vector<8x128xf32>
    %20 = arith.mulf %18, %19 : vector<8x128xf32>
    %21 = arith.addf %15, %20 : vector<8x128xf32>
    %22 = vector.extract_strided_slice %0 {offsets = [0, 3], sizes = [8, 1], strides = [1, 1]} : vector<8x4xf32> to vector<8x1xf32>
    %23 = vector.extract_strided_slice %1 {offsets = [3, 0], sizes = [1, 128], strides = [1, 1]} : vector<8x128xf32> to vector<1x128xf32>
    %24 = vector.broadcast %22 : vector<8x1xf32> to vector<8x128xf32>
    %25 = vector.broadcast %23 : vector<1x128xf32> to vector<8x128xf32>
    %26 = arith.mulf %24, %25 : vector<8x128xf32>
    %27 = arith.addf %21, %26 : vector<8x128xf32>
    %28 = arith.mulf %27, %27 : vector<8x128xf32>
    %29 = vector.extract_strided_slice %1 {offsets = [7, 0], sizes = [1, 128], strides = [1, 1]} : vector<8x128xf32> to vector<1x128xf32>
    %30 = vector.broadcast %29 : vector<1x128xf32> to vector<8x128xf32>
    %31 = arith.mulf %28, %30 : vector<8x128xf32>
    %cst = arith.constant dense<0.000000e+00> : vector<8xf32>
    %32 = vector.multi_reduction <add>, %31, %cst [1] : vector<8x128xf32> to vector<8xf32>
    %33 = vector.shape_cast %32 : vector<8xf32> to vector<8x1xf32>
    %cst_3 = arith.constant dense<0.000000e+00> : vector<8xf32>
    %34 = vector.multi_reduction <add>, %28, %cst_3 [1] : vector<8x128xf32> to vector<8xf32>
    %35 = vector.shape_cast %34 : vector<8xf32> to vector<8x1xf32>
    %36 = arith.subf %35, %33 : vector<8x1xf32>
    %37 = arith.subf %33, %36 : vector<8x1xf32>
    %38 = vector.broadcast %37 : vector<8x1xf32> to vector<8x128xf32>
    %39 = vector.broadcast %29 : vector<1x128xf32> to vector<8x128xf32>
    %40 = arith.mulf %38, %39 : vector<8x128xf32>
    %41 = vector.broadcast %36 : vector<8x1xf32> to vector<8x128xf32>
    %42 = arith.addf %41, %40 : vector<8x128xf32>
    %cst_4 = arith.constant 1.562500e-02 : f32
    %43 = vector.broadcast %cst_4 : f32 to vector<8x128xf32>
    %44 = arith.mulf %42, %43 : vector<8x128xf32>
    %cst_5 = arith.constant 9.99999974E-6 : f32
    %45 = vector.broadcast %cst_5 : f32 to vector<8x128xf32>
    %46 = arith.addf %44, %45 : vector<8x128xf32>
    %47 = math.rsqrt %46 : vector<8x128xf32>
    %48 = arith.mulf %27, %47 : vector<8x128xf32>
    %49 = vector.extract_strided_slice %1 {offsets = [5, 0], sizes = [1, 128], strides = [1, 1]} : vector<8x128xf32> to vector<1x128xf32>
    %50 = vector.extract_strided_slice %1 {offsets = [6, 0], sizes = [1, 128], strides = [1, 1]} : vector<8x128xf32> to vector<1x128xf32>
    %51 = vector.broadcast %49 : vector<1x128xf32> to vector<8x128xf32>
    %52 = arith.mulf %48, %51 : vector<8x128xf32>
    %53 = vector.broadcast %50 : vector<1x128xf32> to vector<8x128xf32>
    %54 = arith.addf %52, %53 : vector<8x128xf32>
    %c0_6 = arith.constant 0 : index
    %c0_7 = arith.constant 0 : index
    %55 = vector.load %arg3[%c0_6, %c0_7] : memref<8x128xf32, #tpu.memory_space<vmem>>, vector<8x128xf32>
    tpu.vector_store %arg3[%c0_6, %c0_7], %54 {strides = array<i32>} : memref<8x128xf32, #tpu.memory_space<vmem>>, vector<8x128xf32>,
    return
  }
  func.func @transform_0(%arg0: i32) -> (i32, i32) {
    %c0_i32 = arith.constant 0 : i32
    %c0_i32_0 = arith.constant 0 : i32
    return %arg0, %c0_i32 : i32, i32
  }
  func.func @transform_1(%arg0: i32) -> (i32, i32) {
    %c0_i32 = arith.constant 0 : i32
    %c0_i32_0 = arith.constant 0 : i32
    %c0_i32_1 = arith.constant 0 : i32
    return %c0_i32, %c0_i32_0 : i32, i32
  }
  func.func @transform_2(%arg0: i32) -> (i32, i32) {
    %c0_i32 = arith.constant 0 : i32
    %c0_i32_0 = arith.constant 0 : i32
    return %arg0, %c0_i32 : i32, i32
  }
}

</mosaic_0001>

<bundles_post_ra>
// kernel: traj_embedding_forward.1
= control target key start
LH: loop header
LB: loop body
LE: loop exit
PB: predicated region body
PF: predicated region fallthrough
CT: control target
= control target key end

     0   :  { %v102_v0 = vmov 0   ;;  %v103_v2 = vmov 2   ;;  %v104_v3 = vmov 1   ;;  %v105_v4 = vmov 3   ;;  %s130_s0 = inlined_call_operand.vmem [shape: f32[8,4], index: 0, kind: input, shape index: {}]   ;;  %s131_s1 = inlined_call_operand.vmem [shape: f32[8,128], index: 1, kind: input, shape index: {}]   ;;  %s132_s2 = inlined_call_operand.vmem [shape: f32[8,128], index: 2, kind: output, shape index: {}]  }
   0x1   :  { %95 = vset.pattern.permute.xlu0 %v102_v0  ;;  %v11_v1 = vld [vmem:[%s130_s0] sm:$0xff]  ;;  %97 = vset.pattern.permute.xlu1 %v103_v2  ;;  %v18_v5 = vlaneseq }
   0x2   :  { %15 = vperm.xlu0 %95, %v11_v1   ;;  %39 = vperm.xlu1 %97, %v11_v1   ;;  %v12_v8 = vld [vmem:[%s131_s1] sm:$0xff] }
   0x3   :  { %v19_v6 = vshrl.u32 %v18_v5, 7 }
   0x5   :  { %v20_v7 = vsub.s32 0, %v19_v6  ;;  %v25_v10 = vsub.s32 4, %v19_v6  ;;  %v34_v11 = vsub.s32 1, %v19_v6  ;;  %v44_v13 = vsub.s32 2, %v19_v6 }
   0x6   :  { %96 = vset.pattern.permute.xlu0 %v104_v3  ;;  %98 = vset.pattern.permute.xlu1 %v105_v4  ;;  %v54_v15 = vsub.s32 3, %v19_v6  ;;  %v61_v28 = vsub.s32 7, %v19_v6  ;;  %v78_v42 = vsub.s32 5, %v19_v6  ;;  %v83_v43 = vsub.s32 6, %v19_v6 }
   0x7   :  { %29 = vperm.xlu0 %96, %v11_v1   ;;  %49 = vperm.xlu1 %98, %v11_v1   ;;  %v21_v9 = vrot.slane %v12_v8, %v20_v7  ;;  %v26_v16 = vrot.slane %v12_v8, %v25_v10  ;;  %v35_v18 = vrot.slane %v12_v8, %v34_v11 }
   0x8   :  { %v45_v19 = vrot.slane %v12_v8, %v44_v13  ;;  %v55_v20 = vrot.slane %v12_v8, %v54_v15  ;;  %v62_v31 = vrot.slane %v12_v8, %v61_v28  ;;  %v79_v44 = vrot.slane %v12_v8, %v78_v42 }
   0x9   :  { %v84_v46 = vrot.slane %v12_v8, %v83_v43 }
   0xb   :  { %99 = vset.pattern.permute.xlu0 %v105_v4 }
  0x81   :  { %v16_v12 = vpop.permute.xlu0 %15  ;;  %v40_v14 = vpop.permute.xlu1 %39 }
  0x82   :  { %v22_v17 = vmul.f32 %v21_v9, %v16_v12  ;;  %v46_v25 = vmul.f32 %v45_v19, %v40_v14 }
  0x84   :  { %v27_v23 = vadd.f32 %v26_v16, %v22_v17 }
  0x86   :  { %v30_v21 = vpop.permute.xlu0 %29  ;;  %v50_v22 = vpop.permute.xlu1 %49 }
  0x87   :  { %v36_v24 = vmul.f32 %v35_v18, %v30_v21  ;;  %v56_v27 = vmul.f32 %v55_v20, %v50_v22 }
  0x89   :  { %v37_v26 = vadd.f32 %v36_v24, %v27_v23 }
  0x8b   :  { %v47_v29 = vadd.f32 %v46_v25, %v37_v26 }
  0x8d   :  { %v57_v30 = vadd.f32 %v56_v27, %v47_v29 }
  0x8f   :  { %v58_v32 = vmul.f32 %v57_v30, %v57_v30 }
  0x91   :  { %66 = vadd.xlane.f32.xlu0 %v58_v32  ;;  %v63_v33 = vmul.f32 %v62_v31, %v58_v32 }
  0x93   :  { %64 = vadd.xlane.f32.xlu1 %v63_v33 }
 0x11e   :  { %v67_v34 = vpop.xlane.xlu0 %66 }
 0x120   :  { %v65_v35 = vpop.xlane.xlu1 %64 }
 0x121   :  { %v68_v36 = vsub.f32 %v67_v34, %v65_v35 }
 0x123   :  { %v69_v37 = vsub.f32 %v65_v35, %v68_v36 }
 0x125   :  { %v70_v38 = vmul.f32 %v69_v37, %v62_v31 }
 0x127   :  { %v71_v39 = vadd.f32 %v70_v38, %v68_v36 }
 0x129   :  { %v72_v40 = vmul.f32 0.015625, %v71_v39 }
 0x12b   :  { %v73_v41 = vadd.f32 1e-05, %v72_v40 }
 0x12d   :  { %100 = vrsqrt.f32 %v73_v41 }
 0x137   :  { %v101_v45 = vpop.eup %100 }
 0x138   :  { %v75_v47 = vmul.f32 %v101_v45, %v57_v30 }
 0x13a   :  { %v80_v48 = vmul.f32 %v79_v44, %v75_v47 }
 0x13c   :  { %v85_v49 = vadd.f32 %v84_v46, %v80_v48 }
 0x13e   :  { %86 = vst [vmem:[%s132_s2] sm:$0xff] %v85_v49 }

</bundles_post_ra>
